<compile_context>
chip_gen: v7x
topology: tpu7x:2x2x1
jax: 0.10.0
libtpu: 0.0.40
codegen_flags: <defaults>
</compile_context>

<pallas_src>
import jax
import jax.numpy as jnp
from jax.experimental import pallas as pl
from jax.experimental.pallas import tpu as pltpu


def _round_up(n, m):
    return ((n + m - 1) // m) * m


def _vmem_budget_and_limit():
    """Generation-aware (working budget, scoped-VMEM limit) in bytes."""
    cap = None
    try:
        cap = int(pltpu.get_tpu_info().vmem_capacity_bytes)
    except Exception:
        cap = None
    if cap is None or cap <= 0:
        cap = 64 * (1 << 20)                 # conservative: assume v7x-sized VMEM
    if cap >= 100 * (1 << 20):               # v5e / v6e: 128 MiB physical VMEM
        return 92 * (1 << 20), 110 * (1 << 20)
    return 44 * (1 << 20), 56 * (1 << 20)    # v7x: 64 MiB physical VMEM


def _select_tiles(M, Dp, Fp, x_bytes, w_bytes, budget):
    """Pick (TM, TF): row tile and hidden-dim tile fitting the VMEM budget."""
    quantum = 256          # fills the 256x256 MXU (v6e/v7x); also a 128-multiple for v5e
    max_tm = 1024

    def footprint(tm, tf, w_bufs):
        weights = w_bufs * (Dp * tf + tf * Dp + tf) * w_bytes + Dp * w_bytes
        acts = 2 * tm * Dp * x_bytes + 2 * tm * Dp * x_bytes   # x + out double-buffered
        scratch = tm * Dp * 4                                   # f32 accumulator
        interm = tm * tf * 4 + tm * Dp * 4                      # h / partial-out temporaries
        return weights + acts + scratch + interm

    # Row-tile candidates (multiples of `quantum`, descending).  For small M,
    # split the rows in two so a 2-TensorCore chip (v7x) keeps both cores busy.
    if M >= 2 * quantum:
        cap = max(quantum, min(max_tm, ((M // 2) // quantum) * quantum))
        tm_candidates = list(range(cap, quantum - 1, -quantum))
    elif M >= 16:
        tm_candidates = [_round_up(-(-M // 2), 8)]
    else:
        tm_candidates = [_round_up(max(M, 1), 8)]

    # Preferred schedule: both weight matrices resident in VMEM (single-buffered).
    for tm in tm_candidates:
        if footprint(tm, Fp, 1) <= budget:
            return tm, Fp

    # Fallback: stream the weights over the hidden dim.  TF must divide Fp
    # exactly (no ragged blocks on a contraction axis).
    tm = tm_candidates[-1]
    lanes = Fp // 128
    for n in range(2, lanes + 1):
        if lanes % n:
            continue
        tf = (lanes // n) * 128
        if footprint(tm, tf, 2) <= budget:
            return tm, tf
    return tm, 128


def _ffn_kernel(x_ref, w1_ref, b1_ref, w2_ref, b2_ref, o_ref, acc_ref):
    f = pl.program_id(1)

    @pl.when(f == 0)
    def _init():
        acc_ref[...] = jnp.zeros_like(acc_ref)

    # fc1 on the MXU, f32 accumulation.
    h = jnp.dot(x_ref[...], w1_ref[...], preferred_element_type=jnp.float32)
    h = h + b1_ref[...].astype(jnp.float32)
    # Exact (erf) GELU in f32, matching torch.nn.functional.gelu's default.
    h = 0.5 * h * (1.0 + jax.lax.erf(h * 0.7071067811865476))
    # Cast at the fc2 dot boundary (bf16 fast path when weights are bf16).
    h = h.astype(w2_ref.dtype)
    # fc2 partial product for this hidden-dim chunk.
    acc_ref[...] += jnp.dot(h, w2_ref[...], preferred_element_type=jnp.float32)

    @pl.when(f == pl.num_programs(1) - 1)
    def _finalize():
        o_ref[...] = (acc_ref[...] + b2_ref[...].astype(jnp.float32)).astype(o_ref.dtype)


def _ffn_pallas(xp, w1p, b1p, w2p, b2p, out_dtype, TM, TF, vmem_limit, single_buffer):
    Mp, Dp = xp.shape
    Fp = w1p.shape[1]
    nM = pl.cdiv(Mp, TM)
    nF = Fp // TF
    resident = (nF == 1)

    def spec(shape, index_map, constant):
        # Invariant operands (constant index_map) only need a single buffer.
        if single_buffer and constant:
            return pl.BlockSpec(shape, index_map, pipeline_mode=pl.Buffered(1))
        return pl.BlockSpec(shape, index_map)

    return pl.pallas_call(
        _ffn_kernel,
        out_shape=jax.ShapeDtypeStruct((Mp, Dp), out_dtype),
        grid=(nM, nF),
        in_specs=[
            spec((TM, Dp), lambda i, f: (i, 0), False),       # x: streamed per row tile
            spec((Dp, TF), lambda i, f: (0, f), resident),    # w1
            spec((1, TF), lambda i, f: (0, f), resident),     # b1
            spec((TF, Dp), lambda i, f: (f, 0), resident),    # w2
            spec((1, Dp), lambda i, f: (0, 0), True),         # b2: always resident
        ],
        out_specs=pl.BlockSpec((TM, Dp), lambda i, f: (i, 0)),
        scratch_shapes=[pltpu.VMEM((TM, Dp), jnp.float32)],
        compiler_params=pltpu.CompilerParams(
            dimension_semantics=("parallel", "arbitrary"),
            vmem_limit_bytes=int(vmem_limit),
        ),
    )(xp, w1p, b1p, w2p, b2p)


def position_wise_feed_forward(x, w1, b1, w2, b2, *, ff_tile=None):
    """x: (B, S, D); w1: (D, F); b1: (F,); w2: (F, D); b2: (D,).

    Weights are stored (in, out), i.e. transposed relative to torch.nn.Linear.
    `ff_tile` optionally forces the hidden-dim streaming tile (testing/tuning).
    """
    B, S, D = x.shape
    F = w1.shape[1]
    M = B * S

    # Lane-dense padded feature dims (no-op for real ViT dims).
    Dp = _round_up(D, 128)
    Fp = _round_up(F, 128)
    Mp = _round_up(M, 8)

    budget, vmem_limit = _vmem_budget_and_limit()
    TM, TF = _select_tiles(M, Dp, Fp, jnp.dtype(x.dtype).itemsize,
                           jnp.dtype(w1.dtype).itemsize, budget)
    if ff_tile is not None:
        assert ff_tile % 128 == 0 and Fp % ff_tile == 0, \
            "ff_tile must be a 128-multiple dividing the padded ff_dim"
        TF = ff_tile

    def maybe_pad(a, target_shape):
        pads = tuple((0, t - s) for s, t in zip(a.shape, target_shape))
        return jnp.pad(a, pads) if any(p[1] for p in pads) else a

    x2d = x.reshape(M, D)                       # free reshape, no copy
    xp = maybe_pad(x2d, (Mp, Dp))               # no copy when D%128==0 and M%8==0
    w1p = maybe_pad(w1, (Dp, Fp))
    b1p = maybe_pad(b1.reshape(1, F), (1, Fp))
    w2p = maybe_pad(w2, (Fp, Dp))
    b2p = maybe_pad(b2.reshape(1, D), (1, Dp))

    try:
        out2d = _ffn_pallas(xp, w1p, b1p, w2p, b2p, x.dtype, TM, TF,
                            vmem_limit, single_buffer=True)
    except Exception:
        # Fallback if this Pallas build rejects pipeline_mode=pl.Buffered(1)
        # on invariant operands; identical semantics, default double-buffering.
        out2d = _ffn_pallas(xp, w1p, b1p, w2p, b2p, x.dtype, TM, TF,
                            vmem_limit, single_buffer=False)

    if Mp != M or Dp != D:
        out2d = out2d[:M, :D]
    return out2d.reshape(B, S, D)


if __name__ == "__main__":
    # Small shapes consistent with the module: tokens of width `dim`,
    # hidden width `ff_dim` (ViT-style 4x expansion).
    B, S, dim, ff_dim = 2, 8, 64, 256

    key = jax.random.PRNGKey(0)
    kx, kw1, kb1, kw2, kb2 = jax.random.split(key, 5)

    x = jax.random.normal(kx, (B, S, dim), dtype=jnp.float32)
    # Parameters stored as (in, out), i.e. transposed vs PyTorch nn.Linear.
    w1 = jax.random.normal(kw1, (dim, ff_dim), dtype=jnp.float32) * 0.05
    b1 = jax.random.normal(kb1, (ff_dim,), dtype=jnp.float32) * 0.05
    w2 = jax.random.normal(kw2, (ff_dim, dim), dtype=jnp.float32) * 0.05
    b2 = jax.random.normal(kb2, (dim,), dtype=jnp.float32) * 0.05

    y = position_wise_feed_forward(x, w1, b1, w2, b2)
    y = jax.block_until_ready(y)

    # Plain-JAX reference (exact erf GELU, as in torch.nn.functional.gelu).
    h_ref = x @ w1 + b1
    h_ref = 0.5 * h_ref * (1.0 + jax.lax.erf(h_ref / jnp.sqrt(2.0)))
    y_ref = h_ref @ w2 + b2
    assert y.shape == (B, S, dim)
    assert jnp.allclose(y, y_ref, atol=1e-4, rtol=1e-4), "mismatch vs reference"

    # Also exercise the hidden-dim streaming (F-tiled, accumulator) path.
    y_tiled = position_wise_feed_forward(x, w1, b1, w2, b2, ff_tile=128)
    y_tiled = jax.block_until_ready(y_tiled)
    assert jnp.allclose(y_tiled, y_ref, atol=1e-4, rtol=1e-4), "F-tiled mismatch"

    print("KERNEL_OK")
</pallas_src>

<mosaic_0001>
module attributes {stable_mosaic.version = 11 : i64} {
  func.func @_ffn_kernel(%arg0: i32, %arg1: i32, %arg2: memref<8x128xf32, #tpu.memory_space<vmem>>, %arg3: memref<128x256xf32, #tpu.memory_space<vmem>>, %arg4: memref<1x256xf32, #tpu.memory_space<vmem>>, %arg5: memref<256x128xf32, #tpu.memory_space<vmem>>, %arg6: memref<1x128xf32, #tpu.memory_space<vmem>>, %arg7: memref<8x128xf32, #tpu.memory_space<vmem>>, %arg8: memref<8x128xf32, #tpu.memory_space<vmem>>) attributes {dimension_semantics = [#tpu.dimension_semantics<parallel>, #tpu.dimension_semantics<arbitrary>], iteration_bounds = array<i64: 2, 1>, scalar_prefetch = 0 : i64, scratch_operands = 1 : i64, tpu.core_type = #tpu.core_type<tc>, window_params = [{transform_indices = @transform_0, window_bounds = array<i64: 8, 128>}, {pipeline_mode = #tpu.pipeline_mode<synchronous>, transform_indices = @transform_1, window_bounds = array<i64: 128, 256>}, {pipeline_mode = #tpu.pipeline_mode<synchronous>, transform_indices = @transform_2, window_bounds = array<i64: 1, 256>}, {pipeline_mode = #tpu.pipeline_mode<synchronous>, transform_indices = @transform_3, window_bounds = array<i64: 256, 128>}, {pipeline_mode = #tpu.pipeline_mode<synchronous>, transform_indices = @transform_4, window_bounds = array<i64: 1, 128>}, {transform_indices = @transform_5, window_bounds = array<i64: 8, 128>}]} {
    %c0_i32 = arith.constant 0 : i32
    %0 = arith.cmpi eq, %arg1, %c0_i32 : i32
    %1 = arith.extui %0 : i1 to i32
    %c0_i32_0 = arith.constant 0 : i32
    %2 = arith.cmpi ne, %1, %c0_i32_0 : i32
    scf.if %2 {
      %cst_18 = arith.constant 0.000000e+00 : f32
      %25 = vector.broadcast %cst_18 : f32 to vector<8x128xf32>
      %c0_19 = arith.constant 0 : index
      %c0_20 = arith.constant 0 : index
      %26 = vector.load %arg8[%c0_19, %c0_20] : memref<8x128xf32, #tpu.memory_space<vmem>>, vector<8x128xf32>
      tpu.vector_store %arg8[%c0_19, %c0_20], %25 {strides = array<i32>} : memref<8x128xf32, #tpu.memory_space<vmem>>, vector<8x128xf32>,
    } else {
    }
    %c0 = arith.constant 0 : index
    %c0_1 = arith.constant 0 : index
    %3 = vector.load %arg2[%c0, %c0_1] : memref<8x128xf32, #tpu.memory_space<vmem>>, vector<8x128xf32>
    %c0_2 = arith.constant 0 : index
    %c0_3 = arith.constant 0 : index
    %4 = vector.load %arg3[%c0_2, %c0_3] : memref<128x256xf32, #tpu.memory_space<vmem>>, vector<128x256xf32>
    %cst = arith.constant dense<0.000000e+00> : vector<8x256xf32>
    %5 = tpu.matmul %3, %4, %cst {dimension_numbers = #tpu.dot_dimension_numbers<[1], [0], [0], [1], [0, 0, 1, 1], [], []>} : vector<8x128xf32>, vector<128x256xf32>, vector<8x256xf32> -> vector<8x256xf32>
    %c0_4 = arith.constant 0 : index
    %c0_5 = arith.constant 0 : index
    %6 = vector.load %arg4[%c0_4, %c0_5] : memref<1x256xf32, #tpu.memory_space<vmem>>, vector<1x256xf32>
    %7 = vector.broadcast %6 : vector<1x256xf32> to vector<8x256xf32>
    %8 = arith.addf %5, %7 : vector<8x256xf32>
    %cst_6 = arith.constant 5.000000e-01 : f32
    %9 = vector.broadcast %cst_6 : f32 to vector<8x256xf32>
    %10 = arith.mulf %9, %8 : vector<8x256xf32>
    %cst_7 = arith.constant 0.707106769 : f32
    %11 = vector.broadcast %cst_7 : f32 to vector<8x256xf32>
    %12 = arith.mulf %8, %11 : vector<8x256xf32>
    %13 = math.erf %12 : vector<8x256xf32>
    %cst_8 = arith.constant 1.000000e+00 : f32
    %14 = vector.broadcast %cst_8 : f32 to vector<8x256xf32>
    %15 = arith.addf %14, %13 : vector<8x256xf32>
    %16 = arith.mulf %10, %15 : vector<8x256xf32>
    %c0_9 = arith.constant 0 : index
    %c0_10 = arith.constant 0 : index
    %17 = vector.load %arg8[%c0_9, %c0_10] : memref<8x128xf32, #tpu.memory_space<vmem>>, vector<8x128xf32>
    %c0_11 = arith.constant 0 : index
    %c0_12 = arith.constant 0 : index
    %18 = vector.load %arg5[%c0_11, %c0_12] : memref<256x128xf32, #tpu.memory_space<vmem>>, vector<256x128xf32>
    %cst_13 = arith.constant dense<0.000000e+00> : vector<8x128xf32>
    %19 = tpu.matmul %16, %18, %cst_13 {dimension_numbers = #tpu.dot_dimension_numbers<[1], [0], [0], [1], [0, 0, 1, 1], [], []>} : vector<8x256xf32>, vector<256x128xf32>, vector<8x128xf32> -> vector<8x128xf32>
    %20 = arith.addf %17, %19 : vector<8x128xf32>
    %c0_14 = arith.constant 0 : index
    %c0_15 = arith.constant 0 : index
    %21 = vector.load %arg8[%c0_14, %c0_15] : memref<8x128xf32, #tpu.memory_space<vmem>>, vector<8x128xf32>
    tpu.vector_store %arg8[%c0_14, %c0_15], %20 {strides = array<i32>} : memref<8x128xf32, #tpu.memory_space<vmem>>, vector<8x128xf32>,
    %c0_i32_16 = arith.constant 0 : i32
    %22 = arith.cmpi eq, %arg1, %c0_i32_16 : i32
    %23 = arith.extui %22 : i1 to i32
    %c0_i32_17 = arith.constant 0 : i32
    %24 = arith.cmpi ne, %23, %c0_i32_17 : i32
    scf.if %24 {
      %c0_18 = arith.constant 0 : index
      %c0_19 = arith.constant 0 : index
      %25 = vector.load %arg8[%c0_18, %c0_19] : memref<8x128xf32, #tpu.memory_space<vmem>>, vector<8x128xf32>
      %c0_20 = arith.constant 0 : index
      %c0_21 = arith.constant 0 : index
      %26 = vector.load %arg6[%c0_20, %c0_21] : memref<1x128xf32, #tpu.memory_space<vmem>>, vector<1x128xf32>
      %27 = vector.broadcast %26 : vector<1x128xf32> to vector<8x128xf32>
      %28 = arith.addf %25, %27 : vector<8x128xf32>
      %c0_22 = arith.constant 0 : index
      %c0_23 = arith.constant 0 : index
      %29 = vector.load %arg7[%c0_22, %c0_23] : memref<8x128xf32, #tpu.memory_space<vmem>>, vector<8x128xf32>
      tpu.vector_store %arg7[%c0_22, %c0_23], %28 {strides = array<i32>} : memref<8x128xf32, #tpu.memory_space<vmem>>, vector<8x128xf32>,
    } else {
    }
    return
  }
  func.func @transform_0(%arg0: i32, %arg1: i32) -> (i32, i32) {
    %c0_i32 = arith.constant 0 : i32
    %c0_i32_0 = arith.constant 0 : i32
    return %arg0, %c0_i32 : i32, i32
  }
  func.func @transform_1(%arg0: i32, %arg1: i32) -> (i32, i32) {
    %c0_i32 = arith.constant 0 : i32
    %c0_i32_0 = arith.constant 0 : i32
    return %c0_i32, %arg1 : i32, i32
  }
  func.func @transform_2(%arg0: i32, %arg1: i32) -> (i32, i32) {
    %c0_i32 = arith.constant 0 : i32
    %c0_i32_0 = arith.constant 0 : i32
    return %c0_i32, %arg1 : i32, i32
  }
  func.func @transform_3(%arg0: i32, %arg1: i32) -> (i32, i32) {
    %c0_i32 = arith.constant 0 : i32
    %c0_i32_0 = arith.constant 0 : i32
    return %arg1, %c0_i32 : i32, i32
  }
  func.func @transform_4(%arg0: i32, %arg1: i32) -> (i32, i32) {
    %c0_i32 = arith.constant 0 : i32
    %c0_i32_0 = arith.constant 0 : i32
    %c0_i32_1 = arith.constant 0 : i32
    return %c0_i32, %c0_i32_0 : i32, i32
  }
  func.func @transform_5(%arg0: i32, %arg1: i32) -> (i32, i32) {
    %c0_i32 = arith.constant 0 : i32
    %c0_i32_0 = arith.constant 0 : i32
    return %arg0, %c0_i32 : i32, i32
  }
}

module attributes {stable_mosaic.version = 11 : i64} {
  func.func @_ffn_kernel(%arg0: i32, %arg1: i32, %arg2: memref<8x128xf32, #tpu.memory_space<vmem>>, %arg3: memref<128x256xf32, #tpu.memory_space<vmem>>, %arg4: memref<1x256xf32, #tpu.memory_space<vmem>>, %arg5: memref<256x128xf32, #tpu.memory_space<vmem>>, %arg6: memref<1x128xf32, #tpu.memory_space<vmem>>, %arg7: memref<8x128xf32, #tpu.memory_space<vmem>>, %arg8: memref<8x128xf32, #tpu.memory_space<vmem>>) attributes {dimension_semantics = [#tpu.dimension_semantics<parallel>, #tpu.dimension_semantics<arbitrary>], iteration_bounds = array<i64: 2, 1>, scalar_prefetch = 0 : i64, scratch_operands = 1 : i64, tpu.core_type = #tpu.core_type<tc>, window_params = [{transform_indices = @transform_0, window_bounds = array<i64: 8, 128>}, {transform_indices = @transform_1, window_bounds = array<i64: 128, 256>}, {transform_indices = @transform_2, window_bounds = array<i64: 1, 256>}, {transform_indices = @transform_3, window_bounds = array<i64: 256, 128>}, {pipeline_mode = #tpu.pipeline_mode<synchronous>, transform_indices = @transform_4, window_bounds = array<i64: 1, 128>}, {transform_indices = @transform_5, window_bounds = array<i64: 8, 128>}]} {
    %c0_i32 = arith.constant 0 : i32
    %0 = arith.cmpi eq, %arg1, %c0_i32 : i32
    %1 = arith.extui %0 : i1 to i32
    %c0_i32_0 = arith.constant 0 : i32
    %2 = arith.cmpi ne, %1, %c0_i32_0 : i32
    scf.if %2 {
      %cst_18 = arith.constant 0.000000e+00 : f32
      %25 = vector.broadcast %cst_18 : f32 to vector<8x128xf32>
      %c0_19 = arith.constant 0 : index
      %c0_20 = arith.constant 0 : index
      %26 = vector.load %arg8[%c0_19, %c0_20] : memref<8x128xf32, #tpu.memory_space<vmem>>, vector<8x128xf32>
      tpu.vector_store %arg8[%c0_19, %c0_20], %25 {strides = array<i32>} : memref<8x128xf32, #tpu.memory_space<vmem>>, vector<8x128xf32>,
    } else {
    }
    %c0 = arith.constant 0 : index
    %c0_1 = arith.constant 0 : index
    %3 = vector.load %arg2[%c0, %c0_1] : memref<8x128xf32, #tpu.memory_space<vmem>>, vector<8x128xf32>
    %c0_2 = arith.constant 0 : index
    %c0_3 = arith.constant 0 : index
    %4 = vector.load %arg3[%c0_2, %c0_3] : memref<128x256xf32, #tpu.memory_space<vmem>>, vector<128x256xf32>
    %cst = arith.constant dense<0.000000e+00> : vector<8x256xf32>
    %5 = tpu.matmul %3, %4, %cst {dimension_numbers = #tpu.dot_dimension_numbers<[1], [0], [0], [1], [0, 0, 1, 1], [], []>} : vector<8x128xf32>, vector<128x256xf32>, vector<8x256xf32> -> vector<8x256xf32>
    %c0_4 = arith.constant 0 : index
    %c0_5 = arith.constant 0 : index
    %6 = vector.load %arg4[%c0_4, %c0_5] : memref<1x256xf32, #tpu.memory_space<vmem>>, vector<1x256xf32>
    %7 = vector.broadcast %6 : vector<1x256xf32> to vector<8x256xf32>
    %8 = arith.addf %5, %7 : vector<8x256xf32>
    %cst_6 = arith.constant 5.000000e-01 : f32
    %9 = vector.broadcast %cst_6 : f32 to vector<8x256xf32>
    %10 = arith.mulf %9, %8 : vector<8x256xf32>
    %cst_7 = arith.constant 0.707106769 : f32
    %11 = vector.broadcast %cst_7 : f32 to vector<8x256xf32>
    %12 = arith.mulf %8, %11 : vector<8x256xf32>
    %13 = math.erf %12 : vector<8x256xf32>
    %cst_8 = arith.constant 1.000000e+00 : f32
    %14 = vector.broadcast %cst_8 : f32 to vector<8x256xf32>
    %15 = arith.addf %14, %13 : vector<8x256xf32>
    %16 = arith.mulf %10, %15 : vector<8x256xf32>
    %c0_9 = arith.constant 0 : index
    %c0_10 = arith.constant 0 : index
    %17 = vector.load %arg8[%c0_9, %c0_10] : memref<8x128xf32, #tpu.memory_space<vmem>>, vector<8x128xf32>
    %c0_11 = arith.constant 0 : index
    %c0_12 = arith.constant 0 : index
    %18 = vector.load %arg5[%c0_11, %c0_12] : memref<256x128xf32, #tpu.memory_space<vmem>>, vector<256x128xf32>
    %cst_13 = arith.constant dense<0.000000e+00> : vector<8x128xf32>
    %19 = tpu.matmul %16, %18, %cst_13 {dimension_numbers = #tpu.dot_dimension_numbers<[1], [0], [0], [1], [0, 0, 1, 1], [], []>} : vector<8x256xf32>, vector<256x128xf32>, vector<8x128xf32> -> vector<8x128xf32>
    %20 = arith.addf %17, %19 : vector<8x128xf32>
    %c0_14 = arith.constant 0 : index
    %c0_15 = arith.constant 0 : index
    %21 = vector.load %arg8[%c0_14, %c0_15] : memref<8x128xf32, #tpu.memory_space<vmem>>, vector<8x128xf32>
    tpu.vector_store %arg8[%c0_14, %c0_15], %20 {strides = array<i32>} : memref<8x128xf32, #tpu.memory_space<vmem>>, vector<8x128xf32>,
    %c0_i32_16 = arith.constant 0 : i32
    %22 = arith.cmpi eq, %arg1, %c0_i32_16 : i32
    %23 = arith.extui %22 : i1 to i32
    %c0_i32_17 = arith.constant 0 : i32
    %24 = arith.cmpi ne, %23, %c0_i32_17 : i32
    scf.if %24 {
      %c0_18 = arith.constant 0 : index
      %c0_19 = arith.constant 0 : index
      %25 = vector.load %arg8[%c0_18, %c0_19] : memref<8x128xf32, #tpu.memory_space<vmem>>, vector<8x128xf32>
      %c0_20 = arith.constant 0 : index
      %c0_21 = arith.constant 0 : index
      %26 = vector.load %arg6[%c0_20, %c0_21] : memref<1x128xf32, #tpu.memory_space<vmem>>, vector<1x128xf32>
      %27 = vector.broadcast %26 : vector<1x128xf32> to vector<8x128xf32>
      %28 = arith.addf %25, %27 : vector<8x128xf32>
      %c0_22 = arith.constant 0 : index
      %c0_23 = arith.constant 0 : index
      %29 = vector.load %arg7[%c0_22, %c0_23] : memref<8x128xf32, #tpu.memory_space<vmem>>, vector<8x128xf32>
      tpu.vector_store %arg7[%c0_22, %c0_23], %28 {strides = array<i32>} : memref<8x128xf32, #tpu.memory_space<vmem>>, vector<8x128xf32>,
    } else {
    }
    return
  }
  func.func @transform_0(%arg0: i32, %arg1: i32) -> (i32, i32) {
    %c0_i32 = arith.constant 0 : i32
    %c0_i32_0 = arith.constant 0 : i32
    return %arg0, %c0_i32 : i32, i32
  }
  func.func @transform_1(%arg0: i32, %arg1: i32) -> (i32, i32) {
    %c0_i32 = arith.constant 0 : i32
    %c0_i32_0 = arith.constant 0 : i32
    return %c0_i32, %arg1 : i32, i32
  }
  func.func @transform_2(%arg0: i32, %arg1: i32) -> (i32, i32) {
    %c0_i32 = arith.constant 0 : i32
    %c0_i32_0 = arith.constant 0 : i32
    return %c0_i32, %arg1 : i32, i32
  }
  func.func @transform_3(%arg0: i32, %arg1: i32) -> (i32, i32) {
    %c0_i32 = arith.constant 0 : i32
    %c0_i32_0 = arith.constant 0 : i32
    return %arg1, %c0_i32 : i32, i32
  }
  func.func @transform_4(%arg0: i32, %arg1: i32) -> (i32, i32) {
    %c0_i32 = arith.constant 0 : i32
    %c0_i32_0 = arith.constant 0 : i32
    %c0_i32_1 = arith.constant 0 : i32
    return %c0_i32, %c0_i32_0 : i32, i32
  }
  func.func @transform_5(%arg0: i32, %arg1: i32) -> (i32, i32) {
    %c0_i32 = arith.constant 0 : i32
    %c0_i32_0 = arith.constant 0 : i32
    return %arg0, %c0_i32 : i32, i32
  }
}

</mosaic_0001>

<bundles_post_ra>
// kernel: tpu_custom_call.1
= control target key start
LH: loop header
LB: loop body
LE: loop exit
PB: predicated region body
PF: predicated region fallthrough
CT: control target
= control target key end

     0   :  { %10 = vsyncpa [#allocation4], 0  ;;  %s1380_s0 = inlined_call_operand.hbm [shape: f32[16,128], index: 0, kind: input, shape index: {}]   ;;  %s1381_s1 = inlined_call_operand.hbm [shape: f32[128,256], index: 1, kind: input, shape index: {}]   ;;  %s1382_s2 = inlined_call_operand.vmem [shape: f32[1,256], index: 2, kind: input, shape index: {}]   ;;  %s1383_s3 = inlined_call_operand.hbm [shape: f32[256,128], index: 3, kind: input, shape index: {}]   ;;  %s1384_s4 = inlined_call_operand.vmem [shape: f32[1,128], index: 4, kind: input, shape index: {}]   ;;  %s1385_s5 = inlined_call_operand.hbm [shape: f32[16,128], index: 5, kind: output, shape index: {}]  }
   0x1   :  { %12 = vsyncpa [#allocation4 + $0x1], 0 }
   0x2   :  { %13 = vsyncpa [#allocation7], 0 }
   0x3   :  { %14 = vsyncpa [#allocation5], 0 }
   0x4   :  { %16 = vsyncpa [#allocation5 + $0x1], 0  ;;  %s1117_s18 = smov 0   ;;  %s1119_s19 = smov 0  }
   0x5   :  { %s1121_s20 = smov 0   ;;  %s1123_s21 = smov 0  }
   0x6   :  { %s1125_s22 = smov 0   ;;  %s1127_s23 = smov 0  }
   0x7 LB: > { %s694_s24 = sadd.s32 4294967295, %s1076_s23   ;;  %s695_s25 = sadd.s32 4294967294, %s1076_s23   ;;  %s1076_s23 = sphi %s1127_s23, %s22_s23   ;;  %s1072_s22 = sphi %s1125_s22, %s1407_s22   ;;  %s1068_s21 = sphi %s1123_s21, %s1406_s21   ;;  %s1064_s20 = sphi %s1121_s20, %s1405_s20   ;;  %s1060_s19 = sphi %s1119_s19, %s1404_s19   ;;  %s1056_s18 = sphi %s1117_s18, %s1403_s18  }
   0x8   : > { %p54_p0 = scmp.ne.s32.totalorder %s1060_s19, %s1056_s18  ;;  %p1151_p1 = scmp.eq.s32.totalorder %s694_s24, 0 }
   0x9   : > { %p1155_p2 = scmp.eq.s32.totalorder %s694_s24, 1  ;;  %p183_p3 = scmp.eq.s32.totalorder %s695_s25, 1 }
   0xa   : > { %s1390_s26 = scalar_select %p1151_p1, 1, 0 }
   0xb   : > { %p1161_p4 = por %p1151_p1, %p54_p0  ;;  %p696_p5 = scmp.ge.s32.totalorder %s1076_s23, 1 }
   0xc   : > { %p1166_p6 = por %p183_p3, %p54_p0  ;;  %p190_p7 = scmp.lt.s32.totalorder %s1076_s23, 3 }
   0xd   : > { %s1392_s28 = scalar_select %p1161_p4, 1, 0 }
   0xe   : > { %s1393_s29 = scalar_select %p1166_p6, 1, 0 }
   0xf   : > { %p1171_p8 = pnand %p696_p5, %p190_p7  ;;  %s1078_s6 = smov [#allocation6]  }
  0x10   : > { %s205_s7 = sshll.u32 %s1078_s6, 4  ;;  %s1079_s9 = smov [#allocation8]   ;;  %s1175_s7 = int_to_ptr.vmem [resolvable:$true] %s205_s7 }
  0x11   : > { %p824_p9 = pneg %p1171_p8  ;;  %s229_s10 = sshll.u32 %s1079_s9, 4  ;;  %s1186_s10 = int_to_ptr.vmem [resolvable:$true] %s229_s10 }
  0x12   : > { %s904_s13 = scalar_lea.hbm %s1381_s1, 4096 }
  0x13   : > { %p1182_p11 = pnand %p824_p9, %p1151_p1  ;;  %p905_p12 = scmp.ne.s32.totalorder %s1381_s1, %s904_s13 }
  0x14   : > { %p911_p5 = scmp.lt.u32.totalorder %s904_s13, %s1381_s1 }
  0x15   : > { %p906_p13 = pneg %p1182_p11 }
  0x17   : > { %p907_p0 = pnand %p906_p13, %p905_p12 }
  0x19   : > { %p908_p3 = pneg %p907_p0 }
  0x1b   : > { %p913_p7 = pnand %p911_p5, %p908_p3 }
  0x1d   : > { %916 = shalt.err (!%p913_p7)
}
  0x1e   : > { %s917_s24 = scalar_lea.vmem %s1175_s7, 4096  ;;  %p925_p1 = scmp.lt.s32.totalorder %s1175_s7, %s1175_s7 }
  0x1f   : > { %p918_p9 = scmp.ne.s32.totalorder %s1175_s7, %s917_s24  ;;  %p926_p12 = scmp.lt.s32.totalorder %s917_s24, %s917_s24 }
  0x21   : > { %p920_p10 = pnand %p918_p9, %p906_p13  ;;  %p927_p0 = por %p926_p12, %p925_p1 }
  0x23   : > { %p921_p6 = pneg %p920_p10 }
  0x25   : > { %p928_p4 = pnand %p927_p0, %p921_p6 }
  0x27   : > { %931 = shalt.err (!%p928_p4)
}
  0x28   : > { %s1080_s25 = smov 256   ;;  %s1081_s6 = smov 16  }
  0x29   : > { %827 = dma.hbm_to_vmem [thread:$0]  (!%p1182_p11), %s1381_s1, 4096, %s1175_s7, [#allocation7], %s1080_s25, %s1080_s25, %s1081_s6  }
  0x2a   : > { %s932_s14 = scalar_lea.hbm %s1383_s3, 4096 }
  0x2b   : > { %p933_p1 = scmp.ne.s32.totalorder %s1383_s3, %s932_s14  ;;  %p939_p10 = scmp.lt.u32.totalorder %s932_s14, %s1383_s3 }
  0x2d   : > { %p935_p4 = pnand %p933_p1, %p906_p13 }
  0x2f   : > { %p936_p6 = pneg %p935_p4 }
  0x31   : > { %p941_p3 = pnand %p939_p10, %p936_p6 }
  0x33   : > { %944 = shalt.err (!%p941_p3)
}
  0x34   : > { %s945_s7 = scalar_lea.vmem %s1186_s10, 4096  ;;  %p953_p12 = scmp.lt.s32.totalorder %s1186_s10, %s1186_s10 }
  0x35   : > { %p946_p5 = scmp.ne.s32.totalorder %s1186_s10, %s945_s7  ;;  %p954_p0 = scmp.lt.s32.totalorder %s945_s7, %s945_s7 }
  0x37   : > { %p948_p7 = pnand %p946_p5, %p906_p13  ;;  %p955_p1 = por %p954_p0, %p953_p12 }
  0x39   : > { %p949_p9 = pneg %p948_p7 }
  0x3b   : > { %p956_p4 = pnand %p955_p1, %p949_p9 }
  0x3d   : > { %959 = shalt.err (!%p956_p4)
}
  0x3e   : > { %s1082_s25 = smov 128   ;;  %s1083_s6 = smov 8  }
  0x3f   : > { %830 = dma.hbm_to_vmem [thread:$0]  (!%p1182_p11), %s1383_s3, 4096, %s1186_s10, [#allocation7], %s1082_s25, %s1082_s25, %s1083_s6  }
  0x40   : > { %s34_s12 = sadd.s32 1, %s1072_s22  ;;  %s41_s13 = sadd.s32 1, %s1064_s20 }
  0x41   : > { %p36_p13 = scmp.ge.s32.totalorder %s34_s12, 2  ;;  %p48_p6 = scmp.ne.s32.totalorder %s1064_s20, %s1060_s19 }
  0x42   : > { %p49_p10 = scmp.eq.s32.totalorder %s1076_s23, 0  ;;  %p841_p3 = scmp.lt.s32.totalorder %s1076_s23, 2 }
  0x43   : > { %s1409_s12 = smov (%p36_p13, %s34_s12), 0  ;;  %p1250_p7 = por %p1155_p2, %p48_p6 }
  0x44   : > { %p50_p5 = por %p49_p10, %p48_p6  ;;  %s38_s8 = ssub.s32 %s1072_s22, %s1409_s12 }
  0x45   : > { %s1396_s14 = scalar_select %p1250_p7, 1, 0 }
  0x46   : > { %s246_s15 = sand.u32 1, %s1064_s20   ;;  %p39_p9 = scmp.eq.s32.totalorder %s38_s8, 0 }
  0x47   : > { %s701_s10 = sshll.u32 %s246_s15, 3  ;;  %s702_s16 = sshll.u32 %s1072_s22, 7 }
  0x48   : > { %s1259_s17 = scalar_select %p39_p9, %s1064_s20, %s41_s13  }
  0x49   : > { %s1264_s25 = scalar_lea.hbm %s1380_s0, %s702_s16  ;;  %s250_s27 = scalar_lea.vmem [#allocation3], %s701_s10 }
  0x4a   : > { %s257_s6 = sshll.u32 %s250_s27, 4  ;;  %p1268_p2 = pnand %p841_p3, %p50_p5  ;;  %s1272_s6 = int_to_ptr.vmem [resolvable:$true] %s257_s6 }
  0x4b   : > { %s247_s11 = scalar_lea.sflag [#allocation4], %s246_s15  ;;  %s960_s13 = scalar_lea.hbm %s1264_s25, 128 }
  0x4c   : > { %p961_p11 = scmp.ne.s32.totalorder %s1264_s25, %s960_s13  ;;  %p962_p12 = pneg %p1268_p2 }
  0x4d   : > { %s965_s16 = scalar_lea.hbm %s1380_s0, 256  ;;  %p966_p4 = scmp.lt.u32.totalorder %s1264_s25, %s1380_s0 }
  0x4e   : > { %p963_p0 = pnand %p962_p12, %p961_p11  ;;  %p967_p13 = scmp.lt.u32.totalorder %s965_s16, %s960_s13 }
  0x4f   : > { %p969_p10 = scmp.lt.u32.totalorder %s960_s13, %s1264_s25 }
  0x50   : > { %p964_p1 = pneg %p963_p0  ;;  %p968_p6 = por %p967_p13, %p966_p4 }
  0x52   : > { %p970_p3 = por %p969_p10, %p968_p6 }
  0x54   : > { %p971_p5 = pnand %p970_p3, %p964_p1 }
  0x56   : > { %974 = shalt.err (!%p971_p5)
}
  0x57   : > { %s975_s15 = scalar_lea.vmem %s1272_s6, 128  ;;  %s1084_s27 = smov [#allocation3]  }
  0x58   : > { %p976_p9 = scmp.ne.s32.totalorder %s1272_s6, %s975_s15  ;;  %s980_s8 = sshll.u32 %s1084_s27, 4  ;;  %s981_s8 = int_to_ptr.vmem [resolvable:$false] %s980_s8 }
  0x59   : > { %s982_s10 = scalar_lea.vmem %s981_s8, 256  ;;  %p983_p7 = scmp.lt.s32.totalorder %s1272_s6, %s981_s8 }
  0x5a   : > { %p978_p11 = pnand %p976_p9, %p962_p12  ;;  %p984_p4 = scmp.lt.s32.totalorder %s982_s10, %s975_s15 }
  0x5c   : > { %p979_p0 = pneg %p978_p11  ;;  %p985_p13 = por %p984_p4, %p983_p7 }
  0x5e   : > { %p986_p6 = pnand %p985_p13, %p979_p0 }
  0x60   : > { %989 = shalt.err (!%p986_p6)
}
  0x61   : > { %834 = dma.hbm_to_vmem [thread:$0]  (!%p1268_p2), %s1264_s25, 128, %s1272_s6, %s247_s11  }
  0x62   : > { %266 = sbr.rel (%p1171_p8) target bundleno = 608 (0x260), region = 40  ;;  %s1302_s13 = sand.u32 (!%p1171_p8), 1, %s1060_s19  }
  0x63   : > { %s704_s16 = sshll.u32 (!%p1171_p8), %s1302_s13, 3  ;;  %s269_s24 = scalar_lea.sflag (!%p1171_p8), [#allocation4], %s1302_s13 }
  0x64   : > { %s1308_s7 = scalar_lea.vmem (!%p1171_p8), [#allocation3], %s704_s16  ;;  %p1398_p7 = scmp.ne.s32.totalorder (!%p1171_p8), %s1392_s28, 0 }
  0x69   : > { %1043 = dma.done.wait (%p1398_p7), %s269_s24, 128  }
  0x6a   : > { %1045 = vsyncadd (%p1398_p7), %s269_s24, 4294967168  ;;  %p1399_p2 = scmp.ne.s32.totalorder %s1390_s26, 0 }
  0x6c   : > { %1047 = dma.done.wait (%p1399_p2), [#allocation7], 8192  }
  0x6d   : > { %1049 = vsyncadd (%p1399_p2), [#allocation7], 4294959104  ;;  %v1085_v0 = vmov 0.0   ;;  %v325_v1 = vld [vmem:[#allocation6 + $0x8] sm:$0xff]  ;;  %v327_v2 = vld [vmem:[#allocation6 + $0x18] sm:$0xff]  ;;  %s710_s6 = sshll.u32 %s1068_s21, 7 }
  0x6e   : > { %432 = vmatprep.mubr.f32.mxu0 %v1085_v0  ;;  %v324_v3 = vld [vmem:[#allocation6] sm:$0xff]  ;;  %v748_v4 = vpack.c.bf16 %v327_v2, %v325_v1  ;;  %v326_v5 = vld [vmem:[#allocation6 + $0x10] sm:$0xff]  ;;  %v329_v6 = vld [vmem:[#allocation6 + $0x28] sm:$0xff]  ;;  %s310_s9 = scalar_lea.vmem [#allocation9], %s704_s16  ;;  %s1331_s8 = scalar_lea.hbm %s1385_s5, %s710_s6 }
  0x6f   : > { %v331_v7 = vld [vmem:[#allocation6 + $0x38] sm:$0xff]  ;;  %v750_v8 = vpack.c.bf16 %v326_v5, %v324_v3  ;;  %v328_v10 = vld [vmem:[#allocation6 + $0x20] sm:$0xff]  ;;  %v330_v11 = vld [vmem:[#allocation6 + $0x30] sm:$0xff]  ;;  %s581_s11 = sshll.u32 %s310_s9, 4  ;;  %s568_s10 = scalar_lea.sflag [#allocation5], %s1302_s13  ;;  %s1333_s11 = int_to_ptr.vmem [resolvable:$true] %s581_s11 }
  0x70   : > { %v752_v9 = vpack.c.bf16 %v331_v7, %v329_v6  ;;  %v333_v12 = vld [vmem:[#allocation6 + $0x48] sm:$0xff]  ;;  %749 = vmatprep.subr.bf16.mxu0 %v748_v4  ;;  %v335_v13 = vld [vmem:[#allocation6 + $0x58] sm:$0xff]  ;;  %v754_v14 = vpack.c.bf16 %v330_v11, %v328_v10  ;;  %v332_v16 = vld [vmem:[#allocation6 + $0x40] sm:$0xff]  ;;  %s990_s24 = scalar_lea.vmem %s1333_s11, 128  ;;  %p1400_p12 = scmp.ne.s32.totalorder %s1396_s14, 0 }
  0x71   : > { %751 = vmatpush1.bf16.msra.mxu0 %v750_v8  ;;  %v756_v15 = vpack.c.bf16 %v335_v13, %v333_v12  ;;  %v334_v17 = vld [vmem:[#allocation6 + $0x50] sm:$0xff]  ;;  %v337_v18 = vld [vmem:[#allocation6 + $0x68] sm:$0xff]  ;;  %v339_v19 = vld [vmem:[#allocation6 + $0x78] sm:$0xff]  ;;  %p991_p8 = scmp.ne.s32.totalorder %s1333_s11, %s990_s24  ;;  %s1086_s21 = smov [#allocation9]  }
  0x72   : > { %753 = vmatprep.subr.bf16.mxu0 %v752_v9  ;;  %v758_v20 = vpack.c.bf16 %v334_v17, %v332_v16  ;;  %v760_v21 = vpack.c.bf16 %v339_v19, %v337_v18  ;;  %v336_v22 = vld [vmem:[#allocation6 + $0x60] sm:$0xff]  ;;  %v338_v23 = vld [vmem:[#allocation6 + $0x70] sm:$0xff]  ;;  %v341_v24 = vld [vmem:[#allocation6 + $0x88] sm:$0xff]  ;;  %s994_s16 = sshll.u32 %s1086_s21, 4  ;;  %s995_s16 = int_to_ptr.vmem [resolvable:$false] %s994_s16 }
  0x73   : > { %v343_v25 = vld [vmem:[#allocation6 + $0x98] sm:$0xff]  ;;  %v340_v26 = vld [vmem:[#allocation6 + $0x80] sm:$0xff]  ;;  %v342_v27 = vld [vmem:[#allocation6 + $0x90] sm:$0xff]  ;;  %v762_v31 = vpack.c.bf16 %v338_v23, %v336_v22  ;;  %p992_p1 = pnand %p991_p8, %p1400_p12  ;;  %p997_p3 = scmp.lt.s32.totalorder %s1333_s11, %s995_s16 }
  0x74   : > { %v466_v28 = vld [vmem:[#allocation8 + $0x80] sm:$0xff]  ;;  %v467_v29 = vld [vmem:[#allocation8 + $0x88] sm:$0xff]  ;;  %v468_v34 = vld [vmem:[#allocation8 + $0x90] sm:$0xff]  ;;  %v764_v36 = vpack.c.bf16 %v343_v25, %v341_v24  ;;  %v766_v46 = vpack.c.bf16 %v342_v27, %v340_v26 }
  0x75   : > { %755 = vmatpush1.bf16.msra.mxu0 %v754_v14  ;;  %v450_v30 = vld [vmem:[#allocation8] sm:$0xff]  ;;  %v780_v32 = vpack.c.bf16 %v467_v29, %v466_v28  ;;  %v451_v33 = vld [vmem:[#allocation8 + $0x8] sm:$0xff]  ;;  %v469_v35 = vld [vmem:[#allocation8 + $0x98] sm:$0xff]  ;;  %p993_p10 = pneg %p992_p1 }
  0x76   : > { %757 = vmatprep.subr.bf16.mxu0 %v756_v15  ;;  %v782_v37 = vpack.c.bf16 %v451_v33, %v450_v30  ;;  %v784_v38 = vpack.c.bf16 %v469_v35, %v468_v34  ;;  %v452_v39 = vld [vmem:[#allocation8 + $0x10] sm:$0xff]  ;;  %v453_v40 = vld [vmem:[#allocation8 + $0x18] sm:$0xff]  ;;  %v470_v41 = vld [vmem:[#allocation8 + $0xa0] sm:$0xff]  ;;  %v358_v34 = vlaneseq }
  0x77   : > { %v345_v42 = vld [vmem:[#allocation6 + $0xa8] sm:$0xff]  ;;  %v347_v43 = vld [vmem:[#allocation6 + $0xb8] sm:$0xff]  ;;  %781 = vmatprep.subr.bf16.mxu1 %v780_v32  ;;  %v786_v45 = vpack.c.bf16 %v453_v40, %v452_v39  ;;  %v454_v48 = vld [vmem:[#allocation8 + $0x20] sm:$0xff] }
  0x78   : > { %v471_v44 = vld [vmem:[#allocation8 + $0xa8] sm:$0xff]  ;;  %783 = vmatpush3.bf16.msra.mxu1 %v782_v37  ;;  %v768_v50 = vpack.c.bf16 %v347_v43, %v345_v42  ;;  %v344_v51 = vld [vmem:[#allocation6 + $0xa0] sm:$0xff]  ;;  %v346_v52 = vld [vmem:[#allocation6 + $0xb0] sm:$0xff]  ;;  %v359_v35 = vshrl.u32 %v358_v34, 7 }
  0x79   : > { %759 = vmatpush1.bf16.msra.mxu0 %v758_v20  ;;  %785 = vmatprep.subr.bf16.mxu1 %v784_v38  ;;  %v788_v47 = vpack.c.bf16 %v471_v44, %v470_v41  ;;  %v455_v49 = vld [vmem:[#allocation8 + $0x28] sm:$0xff]  ;;  %v351_v54 = vld [vmem:[#allocation6 + $0xd8] sm:$0xff]  ;;  %v770_v56 = vpack.c.bf16 %v346_v52, %v344_v51  ;;  %v348_v58 = vld [vmem:[#allocation6 + $0xc0] sm:$0xff] }
  0x7a   : > { %761 = vmatprep.subr.bf16.mxu0 %v760_v21  ;;  %v349_v53 = vld [vmem:[#allocation6 + $0xc8] sm:$0xff]  ;;  %v790_v55 = vpack.c.bf16 %v455_v49, %v454_v48  ;;  %v350_v59 = vld [vmem:[#allocation6 + $0xd0] sm:$0xff]  ;;  %v355_v61 = vld [vmem:[#allocation6 + $0xf8] sm:$0xff]  ;;  %v364_v38 = vsub.s32 1, %v359_v35 }
  0x7b   : > { %v772_v57 = vpack.c.bf16 %v351_v54, %v349_v53  ;;  %v353_v60 = vld [vmem:[#allocation6 + $0xe8] sm:$0xff]  ;;  %v774_v62 = vpack.c.bf16 %v350_v59, %v348_v58  ;;  %v352_v0 = vld [vmem:[#allocation6 + $0xe0] sm:$0xff]  ;;  %v354_v1 = vld [vmem:[#allocation6 + $0xf0] sm:$0xff] }
  0x7c   : > { %787 = vmatpush3.bf16.msra.mxu1 %v786_v45  ;;  %v776_v63 = vpack.c.bf16 %v355_v61, %v353_v60  ;;  %v778_v2 = vpack.c.bf16 %v354_v1, %v352_v0  ;;  %v323_v3 = vld [vmem:[%s1308_s7] sm:$0xff]  ;;  %v474_v10 = vld [vmem:[#allocation8 + $0xc0] sm:$0xff]  ;;  %v475_v11 = vld [vmem:[#allocation8 + $0xc8] sm:$0xff]  ;;  %s996_s7 = scalar_lea.vmem %s995_s16, 256 }
  0x7d   : > { %763 = vmatpush1.bf16.msra.mxu0 %v762_v31  ;;  %789 = vmatprep.subr.bf16.mxu1 %v788_v47  ;;  %v472_v4 = vld [vmem:[#allocation8 + $0xb0] sm:$0xff]  ;;  %v473_v5 = vld [vmem:[#allocation8 + $0xb8] sm:$0xff]  ;;  %v796_v12 = vpack.c.bf16 %v475_v11, %v474_v10  ;;  %v458_v13 = vld [vmem:[#allocation8 + $0x40] sm:$0xff]  ;;  %p998_p5 = scmp.lt.s32.totalorder %s996_s7, %s990_s24 }
  0x7e   : > { %765 = vmatprep.subr.bf16.mxu0 %v764_v36  ;;  %v792_v6 = vpack.c.bf16 %v473_v5, %v472_v4  ;;  %v456_v7 = vld [vmem:[#allocation8 + $0x30] sm:$0xff]  ;;  %v457_v8 = vld [vmem:[#allocation8 + $0x38] sm:$0xff]  ;;  %v459_v14 = vld [vmem:[#allocation8 + $0x48] sm:$0xff]  ;;  %v360_v36 = vsub.s32 0, %v359_v35 }
  0x7f   : > { %v794_v9 = vpack.c.bf16 %v457_v8, %v456_v7  ;;  %v798_v15 = vpack.c.bf16 %v459_v14, %v458_v13  ;;  %v476_v16 = vld [vmem:[#allocation8 + $0xd0] sm:$0xff]  ;;  %v477_v17 = vld [vmem:[#allocation8 + $0xd8] sm:$0xff]  ;;  %v478_v22 = vld [vmem:[#allocation8 + $0xe0] sm:$0xff]  ;;  %p999_p9 = por %p998_p5, %p997_p3 }
  0x80   : > { %791 = vmatpush3.bf16.msra.mxu1 %v790_v55  ;;  %v800_v18 = vpack.c.bf16 %v477_v17, %v476_v16  ;;  %v460_v19 = vld [vmem:[#allocation8 + $0x50] sm:$0xff]  ;;  %v461_v20 = vld [vmem:[#allocation8 + $0x58] sm:$0xff]  ;;  %v479_v23 = vld [vmem:[#allocation8 + $0xe8] sm:$0xff] }
  0x81   : > { %767 = vmatpush1.bf16.msra.mxu0 %v766_v46  ;;  %793 = vmatprep.subr.bf16.mxu1 %v792_v6  ;;  %v802_v21 = vpack.c.bf16 %v461_v20, %v460_v19  ;;  %v804_v24 = vpack.c.bf16 %v479_v23, %v478_v22  ;;  %v462_v25 = vld [vmem:[#allocation8 + $0x60] sm:$0xff]  ;;  %v463_v26 = vld [vmem:[#allocation8 + $0x68] sm:$0xff]  ;;  %v480_v28 = vld [vmem:[#allocation8 + $0xf0] sm:$0xff]  ;;  %p1000_p11 = pnand %p999_p9, %p993_p10 }
  0x82   : > { %769 = vmatprep.subr.bf16.mxu0 %v768_v50  ;;  %v806_v27 = vpack.c.bf16 %v463_v26, %v462_v25  ;;  %v481_v29 = vld [vmem:[#allocation8 + $0xf8] sm:$0xff]  ;;  %v464_v31 = vld [vmem:[#allocation8 + $0x70] sm:$0xff] }
  0x83   : > { %v808_v30 = vpack.c.bf16 %v481_v29, %v480_v28  ;;  %v465_v32 = vld [vmem:[#allocation8 + $0x78] sm:$0xff]  ;;  %v356_v37 = vld [vmem:[%s1382_s2] sm:$0x3] }
  0x84   : > { %795 = vmatpush3.bf16.msra.mxu1 %v794_v9  ;;  %v810_v33 = vpack.c.bf16 %v465_v32, %v464_v31  ;;  %v361_v39 = vrot.slane %v356_v37, %v360_v36  ;;  %v365_v40 = vrot.slane %v356_v37, %v364_v38 }
  0x85   : > { %771 = vmatpush1.bf16.msra.mxu0 %v770_v56  ;;  %797 = vmatprep.subr.bf16.mxu1 %v796_v12 }
  0x86   : > { %773 = vmatprep.subr.bf16.mxu0 %v772_v57  ;;  %v708_v57 = vld [vmem:[%s1384_s4] ss:$0 sm:$0xff] }
  0x88   : > { %799 = vmatpush3.bf16.msra.mxu1 %v798_v15 }
  0x89   : > { %775 = vmatpush1.bf16.msra.mxu0 %v774_v62  ;;  %801 = vmatprep.subr.bf16.mxu1 %v800_v18 }
  0x8a   : > { %777 = vmatprep.subr.bf16.mxu0 %v776_v63 }
  0x8c   : > { %803 = vmatpush3.bf16.msra.mxu1 %v802_v21 }
  0x8d   : > { %779 = vmatpush1.bf16.msra.mxu0 %v778_v2  ;;  %805 = vmatprep.subr.bf16.mxu1 %v804_v24 }
  0x90   : > { %433 = vmatmul.mubr.f32.vlgmr.msra.gmra.mrb[0].mxu0 %v323_v3  ;;  %807 = vmatpush3.bf16.msra.mxu1 %v806_v27 }
  0x91   : > { %809 = vmatprep.subr.bf16.mxu1 %v808_v30 }
  0x94   : > { %811 = vmatpush3.bf16.msra.mxu1 %v810_v33 }
 0x163   : > { %v434_v41 = vpop.f32.mrb[0].mxu0 }
 0x164   : > { %v435_v42 = vadd.f32 %v434_v41, %v361_v39  ;;  %v436_v43 = vpop.f32.mrb[1].mxu0 }
 0x165   : > { %v437_v44 = vadd.f32 %v436_v43, %v365_v40 }
 0x166   : > { %v441_v45 = vmul.f32 0.70710677, %v435_v42  ;;  %v439_v52 = vmul.f32 0.5, %v435_v42 }
 0x167   : > { %v442_v46 = vmul.f32 0.70710677, %v437_v44  ;;  %v440_v50 = vmul.f32 0.5, %v437_v44 }
 0x168   : > { %900 = verf.f32 %v441_v45 }
 0x169   : > { %902 = verf.f32 %v442_v46 }
 0x172   : > { %v901_v47 = vpop.eup %900 }
 0x173   : > { %v903_v48 = vpop.eup %902  ;;  %v445_v49 = vadd.f32 1.0, %v901_v47 }
 0x174   : > { %v446_v51 = vadd.f32 1.0, %v903_v48 }
 0x175   : > { %v447_v54 = vmul.f32 %v445_v49, %v439_v52 }
 0x176   : > { %v448_v53 = vmul.f32 %v446_v51, %v440_v50 }
 0x178   : > { %546 = vmatprep.mubr.f32.mxu1 %v448_v53 }
 0x179   : > { %547 = vmatmul.mubr.f32.vlgmr.msra.gmra.mrb[0].mxu1 %v447_v54 }
 0x24c   : > { %v745_v55 = vpop.f32.mrb[0].mxu1 }
 0x24d   : > { %v746_v56 = vpop.f32.mrb[1].mxu1 }
 0x24e   : > { %v747_v58 = vadd.f32 %v746_v56, %v745_v55 }
 0x250   : > { %v565_v59 = vadd.f32 %v747_v58, %v708_v57 }
 0x252   : > { %566 = vst [vmem:[%s310_s9] sm:$0xff] %v565_v59 }
 0x253   : > { %1003 = shalt.err (!%p1000_p11)
}
 0x254   : > { %s1004_s13 = scalar_lea.hbm %s1331_s8, 128  ;;  %s1008_s30 = scalar_lea.hbm %s1385_s5, 256 }
 0x255   : > { %p1005_p0 = scmp.ne.s32.totalorder %s1331_s8, %s1004_s13  ;;  %p1009_p6 = scmp.lt.u32.totalorder %s1331_s8, %s1385_s5 }
 0x256   : > { %p1010_p7 = scmp.lt.u32.totalorder %s1008_s30, %s1004_s13  ;;  %p1012_p8 = scmp.lt.u32.totalorder %s1004_s13, %s1331_s8 }
 0x257   : > { %p1006_p4 = pnand %p1005_p0, %p1400_p12 }
 0x258   : > { %p1011_p2 = por %p1010_p7, %p1009_p6 }
 0x259   : > { %p1007_p13 = pneg %p1006_p4 }
 0x25a   : > { %p1013_p1 = por %p1012_p8, %p1011_p2 }
 0x25c   : > { %p1014_p10 = pnand %p1013_p1, %p1007_p13 }
 0x25e   : > { %1017 = shalt.err (!%p1014_p10)
}
 0x25f   : > { %822 = dma.vmem_to_hbm [thread:$0]  (%p1400_p12), %s1333_s11, 128, %s1331_s8, %s568_s10  }
 0x260 PF: > { %s593_s9 = sand.u32 1, %s1056_s18   ;;  %p1401_p3 = scmp.ne.s32.totalorder %s1393_s29, 0 }
 0x261   : > { %p1402_p5 = scmp.ge.s32.totalorder %s1076_s23, 2  ;;  %s594_s15 = scalar_lea.sflag [#allocation5], %s593_s9 }
 0x263   : > { %p836_p9 = pnand %p1402_p5, %p1401_p3 }
 0x265   : > { %1051 = dma.done.wait (!%p836_p9), %s594_s15, 128  }
 0x266   : > { %1053 = vsyncadd (!%p836_p9), %s594_s15, 4294967168  ;;  %s22_s23 = sadd.s32 1, %s1076_s23   ;;  %s1403_s18 = smov %s1060_s19 }
 0x267   : > { %p19_p11 = scmp.ge.s32.totalorder %s22_s23, 4   ;;  %s1404_s19 = smov %s1064_s20 }
 0x268   : > { %s1405_s20 = smov %s1259_s17  ;;  %s1406_s21 = smov %s1072_s22 }
 0x269   : > { %s1407_s22 = smov %s1409_s12  ;;  %21 = sbr.rel (!%p19_p11) target bundleno = 7 (0x7), region = 106 }
 0x270   :  { %599 = vsyncpa [#allocation4], 1 }
 0x271   :  { %601 = vsyncpa [#allocation4 + $0x1], 1 }
 0x272   :  { %602 = vsyncpa [#allocation7], 1 }
 0x273   :  { %603 = vsyncpa [#allocation5], 1 }
 0x274   :  { %605 = vsyncpa [#allocation5 + $0x1], 1 }

// kernel: tpu_custom_call.1
= control target key start
LH: loop header
LB: loop body
LE: loop exit
PB: predicated region body
PF: predicated region fallthrough
CT: control target
= control target key end

     0   :  { %10 = vsyncpa [#allocation4], 0  ;;  %s1380_s0 = inlined_call_operand.hbm [shape: f32[16,128], index: 0, kind: input, shape index: {}]   ;;  %s1381_s1 = inlined_call_operand.hbm [shape: f32[128,256], index: 1, kind: input, shape index: {}]   ;;  %s1382_s2 = inlined_call_operand.vmem [shape: f32[1,256], index: 2, kind: input, shape index: {}]   ;;  %s1383_s3 = inlined_call_operand.hbm [shape: f32[256,128], index: 3, kind: input, shape index: {}]   ;;  %s1384_s4 = inlined_call_operand.vmem [shape: f32[1,128], index: 4, kind: input, shape index: {}]   ;;  %s1385_s5 = inlined_call_operand.hbm [shape: f32[16,128], index: 5, kind: output, shape index: {}]  }
   0x1   :  { %12 = vsyncpa [#allocation4 + $0x1], 0 }
   0x2   :  { %13 = vsyncpa [#allocation7], 0 }
   0x3   :  { %14 = vsyncpa [#allocation5], 0 }
   0x4   :  { %16 = vsyncpa [#allocation5 + $0x1], 0  ;;  %s1117_s18 = smov 0   ;;  %s1119_s19 = smov 0  }
   0x5   :  { %s1121_s20 = smov 0   ;;  %s1123_s21 = smov 0  }
   0x6   :  { %s1125_s22 = smov 0   ;;  %s1127_s23 = smov 0  }
   0x7 LB: > { %s694_s24 = sadd.s32 4294967295, %s1076_s23   ;;  %s695_s25 = sadd.s32 4294967294, %s1076_s23   ;;  %s1076_s23 = sphi %s1127_s23, %s22_s23   ;;  %s1072_s22 = sphi %s1125_s22, %s1407_s22   ;;  %s1068_s21 = sphi %s1123_s21, %s1406_s21   ;;  %s1064_s20 = sphi %s1121_s20, %s1405_s20   ;;  %s1060_s19 = sphi %s1119_s19, %s1404_s19   ;;  %s1056_s18 = sphi %s1117_s18, %s1403_s18  }
   0x8   : > { %p54_p0 = scmp.ne.s32.totalorder %s1060_s19, %s1056_s18  ;;  %p1151_p1 = scmp.eq.s32.totalorder %s694_s24, 0 }
   0x9   : > { %p1155_p2 = scmp.eq.s32.totalorder %s694_s24, 1  ;;  %p183_p3 = scmp.eq.s32.totalorder %s695_s25, 1 }
   0xa   : > { %s1390_s26 = scalar_select %p1151_p1, 1, 0 }
   0xb   : > { %p1161_p4 = por %p1151_p1, %p54_p0  ;;  %p696_p5 = scmp.ge.s32.totalorder %s1076_s23, 1 }
   0xc   : > { %p1166_p6 = por %p183_p3, %p54_p0  ;;  %p190_p7 = scmp.lt.s32.totalorder %s1076_s23, 3 }
   0xd   : > { %s1392_s28 = scalar_select %p1161_p4, 1, 0 }
   0xe   : > { %s1393_s29 = scalar_select %p1166_p6, 1, 0 }
   0xf   : > { %p1171_p8 = pnand %p696_p5, %p190_p7  ;;  %s1078_s6 = smov [#allocation6]  }
  0x10   : > { %s205_s7 = sshll.u32 %s1078_s6, 4  ;;  %s1079_s9 = smov [#allocation8]   ;;  %s1175_s7 = int_to_ptr.vmem [resolvable:$true] %s205_s7 }
  0x11   : > { %p824_p9 = pneg %p1171_p8  ;;  %s229_s10 = sshll.u32 %s1079_s9, 4  ;;  %s1186_s10 = int_to_ptr.vmem [resolvable:$true] %s229_s10 }
  0x12   : > { %s904_s13 = scalar_lea.hbm %s1381_s1, 4096 }
  0x13   : > { %p1182_p11 = pnand %p824_p9, %p1151_p1  ;;  %p905_p12 = scmp.ne.s32.totalorder %s1381_s1, %s904_s13 }
  0x14   : > { %p911_p5 = scmp.lt.u32.totalorder %s904_s13, %s1381_s1 }
  0x15   : > { %p906_p13 = pneg %p1182_p11 }
  0x17   : > { %p907_p0 = pnand %p906_p13, %p905_p12 }
  0x19   : > { %p908_p3 = pneg %p907_p0 }
  0x1b   : > { %p913_p7 = pnand %p911_p5, %p908_p3 }
  0x1d   : > { %916 = shalt.err (!%p913_p7)
}
  0x1e   : > { %s917_s24 = scalar_lea.vmem %s1175_s7, 4096  ;;  %p925_p1 = scmp.lt.s32.totalorder %s1175_s7, %s1175_s7 }
  0x1f   : > { %p918_p9 = scmp.ne.s32.totalorder %s1175_s7, %s917_s24  ;;  %p926_p12 = scmp.lt.s32.totalorder %s917_s24, %s917_s24 }
  0x21   : > { %p920_p10 = pnand %p918_p9, %p906_p13  ;;  %p927_p0 = por %p926_p12, %p925_p1 }
  0x23   : > { %p921_p6 = pneg %p920_p10 }
  0x25   : > { %p928_p4 = pnand %p927_p0, %p921_p6 }
  0x27   : > { %931 = shalt.err (!%p928_p4)
}
  0x28   : > { %s1080_s25 = smov 256   ;;  %s1081_s6 = smov 16  }
  0x29   : > { %827 = dma.hbm_to_vmem [thread:$0]  (!%p1182_p11), %s1381_s1, 4096, %s1175_s7, [#allocation7], %s1080_s25, %s1080_s25, %s1081_s6  }
  0x2a   : > { %s932_s14 = scalar_lea.hbm %s1383_s3, 4096 }
  0x2b   : > { %p933_p1 = scmp.ne.s32.totalorder %s1383_s3, %s932_s14  ;;  %p939_p10 = scmp.lt.u32.totalorder %s932_s14, %s1383_s3 }
  0x2d   : > { %p935_p4 = pnand %p933_p1, %p906_p13 }
  0x2f   : > { %p936_p6 = pneg %p935_p4 }
  0x31   : > { %p941_p3 = pnand %p939_p10, %p936_p6 }
  0x33   : > { %944 = shalt.err (!%p941_p3)
}
  0x34   : > { %s945_s7 = scalar_lea.vmem %s1186_s10, 4096  ;;  %p953_p12 = scmp.lt.s32.totalorder %s1186_s10, %s1186_s10 }
  0x35   : > { %p946_p5 = scmp.ne.s32.totalorder %s1186_s10, %s945_s7  ;;  %p954_p0 = scmp.lt.s32.totalorder %s945_s7, %s945_s7 }
  0x37   : > { %p948_p7 = pnand %p946_p5, %p906_p13  ;;  %p955_p1 = por %p954_p0, %p953_p12 }
  0x39   : > { %p949_p9 = pneg %p948_p7 }
  0x3b   : > { %p956_p4 = pnand %p955_p1, %p949_p9 }
  0x3d   : > { %959 = shalt.err (!%p956_p4)
}
  0x3e   : > { %s1082_s25 = smov 128   ;;  %s1083_s6 = smov 8  }
  0x3f   : > { %830 = dma.hbm_to_vmem [thread:$0]  (!%p1182_p11), %s1383_s3, 4096, %s1186_s10, [#allocation7], %s1082_s25, %s1082_s25, %s1083_s6  }
  0x40   : > { %s34_s12 = sadd.s32 1, %s1072_s22  ;;  %s41_s13 = sadd.s32 1, %s1064_s20 }
  0x41   : > { %p36_p13 = scmp.ge.s32.totalorder %s34_s12, 2  ;;  %p48_p6 = scmp.ne.s32.totalorder %s1064_s20, %s1060_s19 }
  0x42   : > { %p49_p10 = scmp.eq.s32.totalorder %s1076_s23, 0  ;;  %p841_p3 = scmp.lt.s32.totalorder %s1076_s23, 2 }
  0x43   : > { %s1409_s12 = smov (%p36_p13, %s34_s12), 0  ;;  %p1250_p7 = por %p1155_p2, %p48_p6 }
  0x44   : > { %p50_p5 = por %p49_p10, %p48_p6  ;;  %s38_s8 = ssub.s32 %s1072_s22, %s1409_s12 }
  0x45   : > { %s1396_s14 = scalar_select %p1250_p7, 1, 0 }
  0x46   : > { %s246_s15 = sand.u32 1, %s1064_s20   ;;  %p39_p9 = scmp.eq.s32.totalorder %s38_s8, 0 }
  0x47   : > { %s701_s10 = sshll.u32 %s246_s15, 3  ;;  %s702_s16 = sshll.u32 %s1072_s22, 7 }
  0x48   : > { %s1259_s17 = scalar_select %p39_p9, %s1064_s20, %s41_s13  }
  0x49   : > { %s1264_s25 = scalar_lea.hbm %s1380_s0, %s702_s16  ;;  %s250_s27 = scalar_lea.vmem [#allocation3], %s701_s10 }
  0x4a   : > { %s257_s6 = sshll.u32 %s250_s27, 4  ;;  %p1268_p2 = pnand %p841_p3, %p50_p5  ;;  %s1272_s6 = int_to_ptr.vmem [resolvable:$true] %s257_s6 }
  0x4b   : > { %s247_s11 = scalar_lea.sflag [#allocation4], %s246_s15  ;;  %s960_s13 = scalar_lea.hbm %s1264_s25, 128 }
  0x4c   : > { %p961_p11 = scmp.ne.s32.totalorder %s1264_s25, %s960_s13  ;;  %p962_p12 = pneg %p1268_p2 }
  0x4d   : > { %s965_s16 = scalar_lea.hbm %s1380_s0, 256  ;;  %p966_p4 = scmp.lt.u32.totalorder %s1264_s25, %s1380_s0 }
  0x4e   : > { %p963_p0 = pnand %p962_p12, %p961_p11  ;;  %p967_p13 = scmp.lt.u32.totalorder %s965_s16, %s960_s13 }
  0x4f   : > { %p969_p10 = scmp.lt.u32.totalorder %s960_s13, %s1264_s25 }
  0x50   : > { %p964_p1 = pneg %p963_p0  ;;  %p968_p6 = por %p967_p13, %p966_p4 }
  0x52   : > { %p970_p3 = por %p969_p10, %p968_p6 }
  0x54   : > { %p971_p5 = pnand %p970_p3, %p964_p1 }
  0x56   : > { %974 = shalt.err (!%p971_p5)
}
  0x57   : > { %s975_s15 = scalar_lea.vmem %s1272_s6, 128  ;;  %s1084_s27 = smov [#allocation3]  }
  0x58   : > { %p976_p9 = scmp.ne.s32.totalorder %s1272_s6, %s975_s15  ;;  %s980_s8 = sshll.u32 %s1084_s27, 4  ;;  %s981_s8 = int_to_ptr.vmem [resolvable:$false] %s980_s8 }
  0x59   : > { %s982_s10 = scalar_lea.vmem %s981_s8, 256  ;;  %p983_p7 = scmp.lt.s32.totalorder %s1272_s6, %s981_s8 }
  0x5a   : > { %p978_p11 = pnand %p976_p9, %p962_p12  ;;  %p984_p4 = scmp.lt.s32.totalorder %s982_s10, %s975_s15 }
  0x5c   : > { %p979_p0 = pneg %p978_p11  ;;  %p985_p13 = por %p984_p4, %p983_p7 }
  0x5e   : > { %p986_p6 = pnand %p985_p13, %p979_p0 }
  0x60   : > { %989 = shalt.err (!%p986_p6)
}
  0x61   : > { %834 = dma.hbm_to_vmem [thread:$0]  (!%p1268_p2), %s1264_s25, 128, %s1272_s6, %s247_s11  }
  0x62   : > { %266 = sbr.rel (%p1171_p8) target bundleno = 608 (0x260), region = 40  ;;  %s1302_s13 = sand.u32 (!%p1171_p8), 1, %s1060_s19  }
  0x63   : > { %s704_s16 = sshll.u32 (!%p1171_p8), %s1302_s13, 3  ;;  %s269_s24 = scalar_lea.sflag (!%p1171_p8), [#allocation4], %s1302_s13 }
  0x64   : > { %s1308_s7 = scalar_lea.vmem (!%p1171_p8), [#allocation3], %s704_s16  ;;  %p1398_p7 = scmp.ne.s32.totalorder (!%p1171_p8), %s1392_s28, 0 }
  0x69   : > { %1043 = dma.done.wait (%p1398_p7), %s269_s24, 128  }
  0x6a   : > { %1045 = vsyncadd (%p1398_p7), %s269_s24, 4294967168  ;;  %p1399_p2 = scmp.ne.s32.totalorder %s1390_s26, 0 }
  0x6c   : > { %1047 = dma.done.wait (%p1399_p2), [#allocation7], 8192  }
  0x6d   : > { %1049 = vsyncadd (%p1399_p2), [#allocation7], 4294959104  ;;  %v1085_v0 = vmov 0.0   ;;  %v325_v1 = vld [vmem:[#allocation6 + $0x8] sm:$0xff]  ;;  %v327_v2 = vld [vmem:[#allocation6 + $0x18] sm:$0xff]  ;;  %s710_s6 = sshll.u32 %s1068_s21, 7 }
  0x6e   : > { %432 = vmatprep.mubr.f32.mxu0 %v1085_v0  ;;  %v324_v3 = vld [vmem:[#allocation6] sm:$0xff]  ;;  %v748_v4 = vpack.c.bf16 %v327_v2, %v325_v1  ;;  %v326_v5 = vld [vmem:[#allocation6 + $0x10] sm:$0xff]  ;;  %v329_v6 = vld [vmem:[#allocation6 + $0x28] sm:$0xff]  ;;  %s310_s9 = scalar_lea.vmem [#allocation9], %s704_s16  ;;  %s1331_s8 = scalar_lea.hbm %s1385_s5, %s710_s6 }
  0x6f   : > { %v331_v7 = vld [vmem:[#allocation6 + $0x38] sm:$0xff]  ;;  %v750_v8 = vpack.c.bf16 %v326_v5, %v324_v3  ;;  %v328_v10 = vld [vmem:[#allocation6 + $0x20] sm:$0xff]  ;;  %v330_v11 = vld [vmem:[#allocation6 + $0x30] sm:$0xff]  ;;  %s581_s11 = sshll.u32 %s310_s9, 4  ;;  %s568_s10 = scalar_lea.sflag [#allocation5], %s1302_s13  ;;  %s1333_s11 = int_to_ptr.vmem [resolvable:$true] %s581_s11 }
  0x70   : > { %v752_v9 = vpack.c.bf16 %v331_v7, %v329_v6  ;;  %v333_v12 = vld [vmem:[#allocation6 + $0x48] sm:$0xff]  ;;  %749 = vmatprep.subr.bf16.mxu0 %v748_v4  ;;  %v335_v13 = vld [vmem:[#allocation6 + $0x58] sm:$0xff]  ;;  %v754_v14 = vpack.c.bf16 %v330_v11, %v328_v10  ;;  %v332_v16 = vld [vmem:[#allocation6 + $0x40] sm:$0xff]  ;;  %s990_s24 = scalar_lea.vmem %s1333_s11, 128  ;;  %p1400_p12 = scmp.ne.s32.totalorder %s1396_s14, 0 }
  0x71   : > { %751 = vmatpush1.bf16.msra.mxu0 %v750_v8  ;;  %v756_v15 = vpack.c.bf16 %v335_v13, %v333_v12  ;;  %v334_v17 = vld [vmem:[#allocation6 + $0x50] sm:$0xff]  ;;  %v337_v18 = vld [vmem:[#allocation6 + $0x68] sm:$0xff]  ;;  %v339_v19 = vld [vmem:[#allocation6 + $0x78] sm:$0xff]  ;;  %p991_p8 = scmp.ne.s32.totalorder %s1333_s11, %s990_s24  ;;  %s1086_s21 = smov [#allocation9]  }
  0x72   : > { %753 = vmatprep.subr.bf16.mxu0 %v752_v9  ;;  %v758_v20 = vpack.c.bf16 %v334_v17, %v332_v16  ;;  %v760_v21 = vpack.c.bf16 %v339_v19, %v337_v18  ;;  %v336_v22 = vld [vmem:[#allocation6 + $0x60] sm:$0xff]  ;;  %v338_v23 = vld [vmem:[#allocation6 + $0x70] sm:$0xff]  ;;  %v341_v24 = vld [vmem:[#allocation6 + $0x88] sm:$0xff]  ;;  %s994_s16 = sshll.u32 %s1086_s21, 4  ;;  %s995_s16 = int_to_ptr.vmem [resolvable:$false] %s994_s16 }
  0x73   : > { %v343_v25 = vld [vmem:[#allocation6 + $0x98] sm:$0xff]  ;;  %v340_v26 = vld [vmem:[#allocation6 + $0x80] sm:$0xff]  ;;  %v342_v27 = vld [vmem:[#allocation6 + $0x90] sm:$0xff]  ;;  %v762_v31 = vpack.c.bf16 %v338_v23, %v336_v22  ;;  %p992_p1 = pnand %p991_p8, %p1400_p12  ;;  %p997_p3 = scmp.lt.s32.totalorder %s1333_s11, %s995_s16 }
  0x74   : > { %v466_v28 = vld [vmem:[#allocation8 + $0x80] sm:$0xff]  ;;  %v467_v29 = vld [vmem:[#allocation8 + $0x88] sm:$0xff]  ;;  %v468_v34 = vld [vmem:[#allocation8 + $0x90] sm:$0xff]  ;;  %v764_v36 = vpack.c.bf16 %v343_v25, %v341_v24  ;;  %v766_v46 = vpack.c.bf16 %v342_v27, %v340_v26 }
  0x75   : > { %755 = vmatpush1.bf16.msra.mxu0 %v754_v14  ;;  %v450_v30 = vld [vmem:[#allocation8] sm:$0xff]  ;;  %v780_v32 = vpack.c.bf16 %v467_v29, %v466_v28  ;;  %v451_v33 = vld [vmem:[#allocation8 + $0x8] sm:$0xff]  ;;  %v469_v35 = vld [vmem:[#allocation8 + $0x98] sm:$0xff]  ;;  %p993_p10 = pneg %p992_p1 }
  0x76   : > { %757 = vmatprep.subr.bf16.mxu0 %v756_v15  ;;  %v782_v37 = vpack.c.bf16 %v451_v33, %v450_v30  ;;  %v784_v38 = vpack.c.bf16 %v469_v35, %v468_v34  ;;  %v452_v39 = vld [vmem:[#allocation8 + $0x10] sm:$0xff]  ;;  %v453_v40 = vld [vmem:[#allocation8 + $0x18] sm:$0xff]  ;;  %v470_v41 = vld [vmem:[#allocation8 + $0xa0] sm:$0xff]  ;;  %v358_v34 = vlaneseq }
  0x77   : > { %v345_v42 = vld [vmem:[#allocation6 + $0xa8] sm:$0xff]  ;;  %v347_v43 = vld [vmem:[#allocation6 + $0xb8] sm:$0xff]  ;;  %781 = vmatprep.subr.bf16.mxu1 %v780_v32  ;;  %v786_v45 = vpack.c.bf16 %v453_v40, %v452_v39  ;;  %v454_v48 = vld [vmem:[#allocation8 + $0x20] sm:$0xff] }
  0x78   : > { %v471_v44 = vld [vmem:[#allocation8 + $0xa8] sm:$0xff]  ;;  %783 = vmatpush3.bf16.msra.mxu1 %v782_v37  ;;  %v768_v50 = vpack.c.bf16 %v347_v43, %v345_v42  ;;  %v344_v51 = vld [vmem:[#allocation6 + $0xa0] sm:$0xff]  ;;  %v346_v52 = vld [vmem:[#allocation6 + $0xb0] sm:$0xff]  ;;  %v359_v35 = vshrl.u32 %v358_v34, 7 }
  0x79   : > { %759 = vmatpush1.bf16.msra.mxu0 %v758_v20  ;;  %785 = vmatprep.subr.bf16.mxu1 %v784_v38  ;;  %v788_v47 = vpack.c.bf16 %v471_v44, %v470_v41  ;;  %v455_v49 = vld [vmem:[#allocation8 + $0x28] sm:$0xff]  ;;  %v351_v54 = vld [vmem:[#allocation6 + $0xd8] sm:$0xff]  ;;  %v770_v56 = vpack.c.bf16 %v346_v52, %v344_v51  ;;  %v348_v58 = vld [vmem:[#allocation6 + $0xc0] sm:$0xff] }
  0x7a   : > { %761 = vmatprep.subr.bf16.mxu0 %v760_v21  ;;  %v349_v53 = vld [vmem:[#allocation6 + $0xc8] sm:$0xff]  ;;  %v790_v55 = vpack.c.bf16 %v455_v49, %v454_v48  ;;  %v350_v59 = vld [vmem:[#allocation6 + $0xd0] sm:$0xff]  ;;  %v355_v61 = vld [vmem:[#allocation6 + $0xf8] sm:$0xff]  ;;  %v364_v38 = vsub.s32 1, %v359_v35 }
  0x7b   : > { %v772_v57 = vpack.c.bf16 %v351_v54, %v349_v53  ;;  %v353_v60 = vld [vmem:[#allocation6 + $0xe8] sm:$0xff]  ;;  %v774_v62 = vpack.c.bf16 %v350_v59, %v348_v58  ;;  %v352_v0 = vld [vmem:[#allocation6 + $0xe0] sm:$0xff]  ;;  %v354_v1 = vld [vmem:[#allocation6 + $0xf0] sm:$0xff] }
  0x7c   : > { %787 = vmatpush3.bf16.msra.mxu1 %v786_v45  ;;  %v776_v63 = vpack.c.bf16 %v355_v61, %v353_v60  ;;  %v778_v2 = vpack.c.bf16 %v354_v1, %v352_v0  ;;  %v323_v3 = vld [vmem:[%s1308_s7] sm:$0xff]  ;;  %v474_v10 = vld [vmem:[#allocation8 + $0xc0] sm:$0xff]  ;;  %v475_v11 = vld [vmem:[#allocation8 + $0xc8] sm:$0xff]  ;;  %s996_s7 = scalar_lea.vmem %s995_s16, 256 }
  0x7d   : > { %763 = vmatpush1.bf16.msra.mxu0 %v762_v31  ;;  %789 = vmatprep.subr.bf16.mxu1 %v788_v47  ;;  %v472_v4 = vld [vmem:[#allocation8 + $0xb0] sm:$0xff]  ;;  %v473_v5 = vld [vmem:[#allocation8 + $0xb8] sm:$0xff]  ;;  %v796_v12 = vpack.c.bf16 %v475_v11, %v474_v10  ;;  %v458_v13 = vld [vmem:[#allocation8 + $0x40] sm:$0xff]  ;;  %p998_p5 = scmp.lt.s32.totalorder %s996_s7, %s990_s24 }
  0x7e   : > { %765 = vmatprep.subr.bf16.mxu0 %v764_v36  ;;  %v792_v6 = vpack.c.bf16 %v473_v5, %v472_v4  ;;  %v456_v7 = vld [vmem:[#allocation8 + $0x30] sm:$0xff]  ;;  %v457_v8 = vld [vmem:[#allocation8 + $0x38] sm:$0xff]  ;;  %v459_v14 = vld [vmem:[#allocation8 + $0x48] sm:$0xff]  ;;  %v360_v36 = vsub.s32 0, %v359_v35 }
  0x7f   : > { %v794_v9 = vpack.c.bf16 %v457_v8, %v456_v7  ;;  %v798_v15 = vpack.c.bf16 %v459_v14, %v458_v13  ;;  %v476_v16 = vld [vmem:[#allocation8 + $0xd0] sm:$0xff]  ;;  %v477_v17 = vld [vmem:[#allocation8 + $0xd8] sm:$0xff]  ;;  %v478_v22 = vld [vmem:[#allocation8 + $0xe0] sm:$0xff]  ;;  %p999_p9 = por %p998_p5, %p997_p3 }
  0x80   : > { %791 = vmatpush3.bf16.msra.mxu1 %v790_v55  ;;  %v800_v18 = vpack.c.bf16 %v477_v17, %v476_v16  ;;  %v460_v19 = vld [vmem:[#allocation8 + $0x50] sm:$0xff]  ;;  %v461_v20 = vld [vmem:[#allocation8 + $0x58] sm:$0xff]  ;;  %v479_v23 = vld [vmem:[#allocation8 + $0xe8] sm:$0xff] }
  0x81   : > { %767 = vmatpush1.bf16.msra.mxu0 %v766_v46  ;;  %793 = vmatprep.subr.bf16.mxu1 %v792_v6  ;;  %v802_v21 = vpack.c.bf16 %v461_v20, %v460_v19  ;;  %v804_v24 = vpack.c.bf16 %v479_v23, %v478_v22  ;;  %v462_v25 = vld [vmem:[#allocation8 + $0x60] sm:$0xff]  ;;  %v463_v26 = vld [vmem:[#allocation8 + $0x68] sm:$0xff]  ;;  %v480_v28 = vld [vmem:[#allocation8 + $0xf0] sm:$0xff]  ;;  %p1000_p11 = pnand %p999_p9, %p993_p10 }
  0x82   : > { %769 = vmatprep.subr.bf16.mxu0 %v768_v50  ;;  %v806_v27 = vpack.c.bf16 %v463_v26, %v462_v25  ;;  %v481_v29 = vld [vmem:[#allocation8 + $0xf8] sm:$0xff]  ;;  %v464_v31 = vld [vmem:[#allocation8 + $0x70] sm:$0xff] }
  0x83   : > { %v808_v30 = vpack.c.bf16 %v481_v29, %v480_v28  ;;  %v465_v32 = vld [vmem:[#allocation8 + $0x78] sm:$0xff]  ;;  %v356_v37 = vld [vmem:[%s1382_s2] sm:$0x3] }
  0x84   : > { %795 = vmatpush3.bf16.msra.mxu1 %v794_v9  ;;  %v810_v33 = vpack.c.bf16 %v465_v32, %v464_v31  ;;  %v361_v39 = vrot.slane %v356_v37, %v360_v36  ;;  %v365_v40 = vrot.slane %v356_v37, %v364_v38 }
  0x85   : > { %771 = vmatpush1.bf16.msra.mxu0 %v770_v56  ;;  %797 = vmatprep.subr.bf16.mxu1 %v796_v12 }
  0x86   : > { %773 = vmatprep.subr.bf16.mxu0 %v772_v57  ;;  %v708_v57 = vld [vmem:[%s1384_s4] ss:$0 sm:$0xff] }
  0x88   : > { %799 = vmatpush3.bf16.msra.mxu1 %v798_v15 }
  0x89   : > { %775 = vmatpush1.bf16.msra.mxu0 %v774_v62  ;;  %801 = vmatprep.subr.bf16.mxu1 %v800_v18 }
  0x8a   : > { %777 = vmatprep.subr.bf16.mxu0 %v776_v63 }
  0x8c   : > { %803 = vmatpush3.bf16.msra.mxu1 %v802_v21 }
  0x8d   : > { %779 = vmatpush1.bf16.msra.mxu0 %v778_v2  ;;  %805 = vmatprep.subr.bf16.mxu1 %v804_v24 }
  0x90   : > { %433 = vmatmul.mubr.f32.vlgmr.msra.gmra.mrb[0].mxu0 %v323_v3  ;;  %807 = vmatpush3.bf16.msra.mxu1 %v806_v27 }
  0x91   : > { %809 = vmatprep.subr.bf16.mxu1 %v808_v30 }
  0x94   : > { %811 = vmatpush3.bf16.msra.mxu1 %v810_v33 }
 0x163   : > { %v434_v41 = vpop.f32.mrb[0].mxu0 }
 0x164   : > { %v435_v42 = vadd.f32 %v434_v41, %v361_v39  ;;  %v436_v43 = vpop.f32.mrb[1].mxu0 }
 0x165   : > { %v437_v44 = vadd.f32 %v436_v43, %v365_v40 }
 0x166   : > { %v441_v45 = vmul.f32 0.70710677, %v435_v42  ;;  %v439_v52 = vmul.f32 0.5, %v435_v42 }
 0x167   : > { %v442_v46 = vmul.f32 0.70710677, %v437_v44  ;;  %v440_v50 = vmul.f32 0.5, %v437_v44 }
 0x168   : > { %900 = verf.f32 %v441_v45 }
 0x169   : > { %902 = verf.f32 %v442_v46 }
 0x172   : > { %v901_v47 = vpop.eup %900 }
 0x173   : > { %v903_v48 = vpop.eup %902  ;;  %v445_v49 = vadd.f32 1.0, %v901_v47 }
 0x174   : > { %v446_v51 = vadd.f32 1.0, %v903_v48 }
 0x175   : > { %v447_v54 = vmul.f32 %v445_v49, %v439_v52 }
 0x176   : > { %v448_v53 = vmul.f32 %v446_v51, %v440_v50 }
 0x178   : > { %546 = vmatprep.mubr.f32.mxu1 %v448_v53 }
 0x179   : > { %547 = vmatmul.mubr.f32.vlgmr.msra.gmra.mrb[0].mxu1 %v447_v54 }
 0x24c   : > { %v745_v55 = vpop.f32.mrb[0].mxu1 }
 0x24d   : > { %v746_v56 = vpop.f32.mrb[1].mxu1 }
 0x24e   : > { %v747_v58 = vadd.f32 %v746_v56, %v745_v55 }
 0x250   : > { %v565_v59 = vadd.f32 %v747_v58, %v708_v57 }
 0x252   : > { %566 = vst [vmem:[%s310_s9] sm:$0xff] %v565_v59 }
 0x253   : > { %1003 = shalt.err (!%p1000_p11)
}
 0x254   : > { %s1004_s13 = scalar_lea.hbm %s1331_s8, 128  ;;  %s1008_s30 = scalar_lea.hbm %s1385_s5, 256 }
 0x255   : > { %p1005_p0 = scmp.ne.s32.totalorder %s1331_s8, %s1004_s13  ;;  %p1009_p6 = scmp.lt.u32.totalorder %s1331_s8, %s1385_s5 }
 0x256   : > { %p1010_p7 = scmp.lt.u32.totalorder %s1008_s30, %s1004_s13  ;;  %p1012_p8 = scmp.lt.u32.totalorder %s1004_s13, %s1331_s8 }
 0x257   : > { %p1006_p4 = pnand %p1005_p0, %p1400_p12 }
 0x258   : > { %p1011_p2 = por %p1010_p7, %p1009_p6 }
 0x259   : > { %p1007_p13 = pneg %p1006_p4 }
 0x25a   : > { %p1013_p1 = por %p1012_p8, %p1011_p2 }
 0x25c   : > { %p1014_p10 = pnand %p1013_p1, %p1007_p13 }
 0x25e   : > { %1017 = shalt.err (!%p1014_p10)
}
 0x25f   : > { %822 = dma.vmem_to_hbm [thread:$0]  (%p1400_p12), %s1333_s11, 128, %s1331_s8, %s568_s10  }
 0x260 PF: > { %s593_s9 = sand.u32 1, %s1056_s18   ;;  %p1401_p3 = scmp.ne.s32.totalorder %s1393_s29, 0 }
 0x261   : > { %p1402_p5 = scmp.ge.s32.totalorder %s1076_s23, 2  ;;  %s594_s15 = scalar_lea.sflag [#allocation5], %s593_s9 }
 0x263   : > { %p836_p9 = pnand %p1402_p5, %p1401_p3 }
 0x265   : > { %1051 = dma.done.wait (!%p836_p9), %s594_s15, 128  }
 0x266   : > { %1053 = vsyncadd (!%p836_p9), %s594_s15, 4294967168  ;;  %s22_s23 = sadd.s32 1, %s1076_s23   ;;  %s1403_s18 = smov %s1060_s19 }
 0x267   : > { %p19_p11 = scmp.ge.s32.totalorder %s22_s23, 4   ;;  %s1404_s19 = smov %s1064_s20 }
 0x268   : > { %s1405_s20 = smov %s1259_s17  ;;  %s1406_s21 = smov %s1072_s22 }
 0x269   : > { %s1407_s22 = smov %s1409_s12  ;;  %21 = sbr.rel (!%p19_p11) target bundleno = 7 (0x7), region = 106 }
 0x270   :  { %599 = vsyncpa [#allocation4], 1 }
 0x271   :  { %601 = vsyncpa [#allocation4 + $0x1], 1 }
 0x272   :  { %602 = vsyncpa [#allocation7], 1 }
 0x273   :  { %603 = vsyncpa [#allocation5], 1 }
 0x274   :  { %605 = vsyncpa [#allocation5 + $0x1], 1 }

</bundles_post_ra>
